<compile_context>
chip_gen: v7x
topology: tpu7x:2x2x1
jax: 0.10.0
libtpu: 0.0.40
codegen_flags: <defaults>
</compile_context>

<pallas_src>
import jax
import jax.numpy as jnp
from jax import lax
from jax.experimental import pallas as pl
from jax.experimental.pallas import tpu as pltpu


def model_kernel(x1_ref, x2_ref, len_ref,
                 w_fc1_ref, b_fc1_ref, w_fc2_ref, b_fc2_ref,
                 w_ih_ref, w_hh_ref, b_lstm_ref,
                 w_c1f_ref, w_c1l_ref, b_c1_ref,
                 w_c2_ref, b_c2_ref,
                 w_fin_ref, b_fin_ref,
                 out_ref,
                 xp_ref):
    f32 = jnp.float32
    B = x1_ref.shape[0]
    TB = x2_ref.shape[0]          # == T * B, timestep-major
    T = TB // B
    H = w_hh_ref.shape[0]

    # ---------- fc branch: fc1 -> relu -> fc2 -> relu ----------
    h1 = jnp.dot(x1_ref[...], w_fc1_ref[...], preferred_element_type=f32) + b_fc1_ref[...]
    h1 = jnp.maximum(h1, 0.0)
    fc_out = jnp.dot(h1, w_fc2_ref[...], preferred_element_type=f32) + b_fc2_ref[...]
    fc_out = jnp.maximum(fc_out, 0.0)

    # ---------- LSTM input projection, hoisted out of the recurrence ----------
    # ONE [T*B, Din] x [Din, 4H] matmul with the (b_ih + b_hh) bias folded in,
    # instead of T tiny matmuls + T bias broadcasts on the serial critical path.
    xp_ref[...] = (jnp.dot(x2_ref[...], w_ih_ref[...], preferred_element_type=f32)
                   + b_lstm_ref[...])                       # [T*B, 4H]

    # ---------- LSTM recurrence (unrolled; only h @ W_hh left inside) ----------
    w_hh = w_hh_ref[...]                                    # hoisted weight load
    lens = len_ref[...]                                     # [B, 1] int32, hoisted

    def step(t, carry):
        h, c, last = carry
        row = pl.multiple_of(t * B, B)
        gates = xp_ref[pl.ds(row, B), :] + jnp.dot(h, w_hh, preferred_element_type=f32)
        i_g = jax.nn.sigmoid(gates[:, 0 * H:1 * H])
        f_g = jax.nn.sigmoid(gates[:, 1 * H:2 * H])
        g_g = jnp.tanh(gates[:, 2 * H:3 * H])
        o_g = jax.nn.sigmoid(gates[:, 3 * H:4 * H])
        c_new = f_g * c + i_g * g_g
        h_new = o_g * jnp.tanh(c_new)
        # capture h at t == length-1  (== pad_packed_sequence + gather at lengths-1)
        mask = (lens - 1) == t                              # [B, 1] broadcasts over H
        last_new = jnp.where(mask, h_new, last)
        return (h_new, c_new, last_new)

    zeros_bh = jnp.zeros((B, H), f32)
    _, _, last_h = lax.fori_loop(0, T, step, (zeros_bh, zeros_bh, zeros_bh), unroll=True)

    # ---------- head: concat -> fc_ac1 -> relu -> fc_ac2 -> relu -> fc_final ----------
    # concat is expressed as a split matmul: [fc_out | last_h] @ W1 == fc_out@W1a + last_h@W1b
    c1 = (jnp.dot(fc_out, w_c1f_ref[...], preferred_element_type=f32)
          + jnp.dot(last_h, w_c1l_ref[...], preferred_element_type=f32)
          + b_c1_ref[...])
    c1 = jnp.maximum(c1, 0.0)
    c2 = jnp.dot(c1, w_c2_ref[...], preferred_element_type=f32) + b_c2_ref[...]
    c2 = jnp.maximum(c2, 0.0)
    out = jnp.dot(c2, w_fin_ref[...], preferred_element_type=f32) + b_fin_ref[...]
    out_ref[...] = out.astype(out_ref.dtype)


def model_forward(x1, x2, lengths, params):
    """x1: [B, Din] f32, x2: [B, T, Din] f32, lengths: [B] int32 (1 <= len <= T)."""
    B, T, Din = x2.shape
    H = params["w_hh"].shape[0]
    # Timestep-major flatten so one matmul projects every (t, b) row at once.
    x2_flat = jnp.transpose(x2, (1, 0, 2)).reshape(T * B, Din)   # [T*B, Din]
    lens2d = lengths.reshape(B, 1).astype(jnp.int32)             # [B, 1]

    args = (
        x1, x2_flat, lens2d,
        params["w_fc1"], params["b_fc1"], params["w_fc2"], params["b_fc2"],
        params["w_ih"], params["w_hh"], params["b_lstm"],
        params["w_c1f"], params["w_c1l"], params["b_c1"],
        params["w_c2"], params["b_c2"],
        params["w_fin"], params["b_fin"],
    )
    in_specs = [pl.BlockSpec(memory_space=pltpu.MemorySpace.VMEM) for _ in args]
    out_spec = pl.BlockSpec(memory_space=pltpu.MemorySpace.VMEM)

    return pl.pallas_call(
        model_kernel,
        out_shape=jax.ShapeDtypeStruct((B, 2), jnp.float32),
        in_specs=in_specs,
        out_specs=out_spec,
        scratch_shapes=[pltpu.VMEM((T * B, 4 * H), jnp.float32)],  # hoisted x-projection
    )(*args)


def init_params(key, input_dim, fc_outdim, lstm_outdim):
    """Deterministic PyTorch-style uniform init; weights stored as [in, out]."""
    keys = iter(jax.random.split(key, 32))

    def linear(in_dim, out_dim):
        k = 1.0 / jnp.sqrt(jnp.float32(in_dim))
        w = jax.random.uniform(next(keys), (in_dim, out_dim), jnp.float32, -k, k)
        b = jax.random.uniform(next(keys), (1, out_dim), jnp.float32, -k, k)
        return w, b

    H = lstm_outdim
    kl = 1.0 / jnp.sqrt(jnp.float32(H))
    p = {}
    p["w_fc1"], p["b_fc1"] = linear(input_dim, 64)
    p["w_fc2"], p["b_fc2"] = linear(64, fc_outdim)
    p["w_ih"] = jax.random.uniform(next(keys), (input_dim, 4 * H), jnp.float32, -kl, kl)
    p["w_hh"] = jax.random.uniform(next(keys), (H, 4 * H), jnp.float32, -kl, kl)
    b_ih = jax.random.uniform(next(keys), (1, 4 * H), jnp.float32, -kl, kl)
    b_hh = jax.random.uniform(next(keys), (1, 4 * H), jnp.float32, -kl, kl)
    p["b_lstm"] = b_ih + b_hh
    # fc_after_concat1: split into fc-branch part and lstm-branch part of the input
    k1 = 1.0 / jnp.sqrt(jnp.float32(fc_outdim + H))
    p["w_c1f"] = jax.random.uniform(next(keys), (fc_outdim, 64), jnp.float32, -k1, k1)
    p["w_c1l"] = jax.random.uniform(next(keys), (H, 64), jnp.float32, -k1, k1)
    p["b_c1"] = jax.random.uniform(next(keys), (1, 64), jnp.float32, -k1, k1)
    p["w_c2"], p["b_c2"] = linear(64, 64)
    p["w_fin"], p["b_fin"] = linear(64, 2)
    return p


def reference_forward(x1, x2, lengths, p):
    """Pure-JAX reference for correctness checking."""
    h1 = jnp.maximum(x1 @ p["w_fc1"] + p["b_fc1"], 0.0)
    fc_out = jnp.maximum(h1 @ p["w_fc2"] + p["b_fc2"], 0.0)

    B, T, _ = x2.shape
    H = p["w_hh"].shape[0]
    h = jnp.zeros((B, H), jnp.float32)
    c = jnp.zeros((B, H), jnp.float32)
    last = jnp.zeros((B, H), jnp.float32)
    for t in range(T):
        gates = x2[:, t, :] @ p["w_ih"] + h @ p["w_hh"] + p["b_lstm"]
        i_g = jax.nn.sigmoid(gates[:, 0 * H:1 * H])
        f_g = jax.nn.sigmoid(gates[:, 1 * H:2 * H])
        g_g = jnp.tanh(gates[:, 2 * H:3 * H])
        o_g = jax.nn.sigmoid(gates[:, 3 * H:4 * H])
        c = f_g * c + i_g * g_g
        h = o_g * jnp.tanh(c)
        last = jnp.where((lengths.reshape(B, 1) - 1) == t, h, last)

    c1 = jnp.maximum(fc_out @ p["w_c1f"] + last @ p["w_c1l"] + p["b_c1"], 0.0)
    c2 = jnp.maximum(c1 @ p["w_c2"] + p["b_c2"], 0.0)
    return c2 @ p["w_fin"] + p["b_fin"]


if __name__ == "__main__":
    # B padded to a full f32 sublane group (8); lstm_outdim=32 -> 4H=128 lanes.
    B, T = 8, 8
    input_dim, fc_outdim, lstm_outdim = 8, 16, 32

    key = jax.random.PRNGKey(0)
    k_x1, k_x2, k_p = jax.random.split(key, 3)

    x1 = jax.random.normal(k_x1, (B, input_dim), jnp.float32)
    x2 = jax.random.normal(k_x2, (B, T, input_dim), jnp.float32)
    lengths = jnp.array([8, 5, 3, 6, 8, 2, 7, 4], dtype=jnp.int32)  # valid lengths in [1, T]

    params = init_params(k_p, input_dim, fc_outdim, lstm_outdim)

    out = model_forward(x1, x2, lengths, params)
    out = jax.block_until_ready(out)

    ref = reference_forward(x1, x2, lengths, params)
    assert out.shape == (B, 2)
    assert jnp.allclose(out, ref, atol=1e-4, rtol=1e-4), (out, ref)

    print("KERNEL_OK")
</pallas_src>

<mosaic_0001>
module attributes {stable_mosaic.version = 11 : i64} {
  func.func @model_kernel(%arg0: memref<8x8xf32, #tpu.memory_space<vmem>>, %arg1: memref<64x8xf32, #tpu.memory_space<vmem>>, %arg2: memref<8x1xi32, #tpu.memory_space<vmem>>, %arg3: memref<8x64xf32, #tpu.memory_space<vmem>>, %arg4: memref<1x64xf32, #tpu.memory_space<vmem>>, %arg5: memref<64x16xf32, #tpu.memory_space<vmem>>, %arg6: memref<1x16xf32, #tpu.memory_space<vmem>>, %arg7: memref<8x128xf32, #tpu.memory_space<vmem>>, %arg8: memref<32x128xf32, #tpu.memory_space<vmem>>, %arg9: memref<1x128xf32, #tpu.memory_space<vmem>>, %arg10: memref<16x64xf32, #tpu.memory_space<vmem>>, %arg11: memref<32x64xf32, #tpu.memory_space<vmem>>, %arg12: memref<1x64xf32, #tpu.memory_space<vmem>>, %arg13: memref<64x64xf32, #tpu.memory_space<vmem>>, %arg14: memref<1x64xf32, #tpu.memory_space<vmem>>, %arg15: memref<64x2xf32, #tpu.memory_space<vmem>>, %arg16: memref<1x2xf32, #tpu.memory_space<vmem>>, %arg17: memref<8x2xf32, #tpu.memory_space<vmem>>, %arg18: memref<64x128xf32, #tpu.memory_space<vmem>>) attributes {dimension_semantics = [], scalar_prefetch = 0 : i64, scratch_operands = 1 : i64, tpu.core_type = #tpu.core_type<tc>} {
    %c0 = arith.constant 0 : index
    %c0_0 = arith.constant 0 : index
    %0 = vector.load %arg0[%c0, %c0_0] : memref<8x8xf32, #tpu.memory_space<vmem>>, vector<8x8xf32>
    %c0_1 = arith.constant 0 : index
    %c0_2 = arith.constant 0 : index
    %1 = vector.load %arg3[%c0_1, %c0_2] : memref<8x64xf32, #tpu.memory_space<vmem>>, vector<8x64xf32>
    %cst = arith.constant dense<0.000000e+00> : vector<8x64xf32>
    %2 = tpu.matmul %0, %1, %cst {dimension_numbers = #tpu.dot_dimension_numbers<[1], [0], [0], [1], [0, 0, 1, 1], [], []>} : vector<8x8xf32>, vector<8x64xf32>, vector<8x64xf32> -> vector<8x64xf32>
    %c0_3 = arith.constant 0 : index
    %c0_4 = arith.constant 0 : index
    %3 = vector.load %arg4[%c0_3, %c0_4] : memref<1x64xf32, #tpu.memory_space<vmem>>, vector<1x64xf32>
    %4 = vector.broadcast %3 : vector<1x64xf32> to vector<8x64xf32>
    %5 = arith.addf %2, %4 : vector<8x64xf32>
    %cst_5 = arith.constant 0.000000e+00 : f32
    %6 = vector.broadcast %cst_5 : f32 to vector<8x64xf32>
    %7 = arith.maximumf %5, %6 : vector<8x64xf32>
    %c0_6 = arith.constant 0 : index
    %c0_7 = arith.constant 0 : index
    %8 = vector.load %arg5[%c0_6, %c0_7] : memref<64x16xf32, #tpu.memory_space<vmem>>, vector<64x16xf32>
    %cst_8 = arith.constant dense<0.000000e+00> : vector<8x16xf32>
    %9 = tpu.matmul %7, %8, %cst_8 {dimension_numbers = #tpu.dot_dimension_numbers<[1], [0], [0], [1], [0, 0, 1, 1], [], []>} : vector<8x64xf32>, vector<64x16xf32>, vector<8x16xf32> -> vector<8x16xf32>
    %c0_9 = arith.constant 0 : index
    %c0_10 = arith.constant 0 : index
    %10 = vector.load %arg6[%c0_9, %c0_10] : memref<1x16xf32, #tpu.memory_space<vmem>>, vector<1x16xf32>
    %11 = vector.broadcast %10 : vector<1x16xf32> to vector<8x16xf32>
    %12 = arith.addf %9, %11 : vector<8x16xf32>
    %cst_11 = arith.constant 0.000000e+00 : f32
    %13 = vector.broadcast %cst_11 : f32 to vector<8x16xf32>
    %14 = arith.maximumf %12, %13 : vector<8x16xf32>
    %c0_12 = arith.constant 0 : index
    %c0_13 = arith.constant 0 : index
    %15 = vector.load %arg1[%c0_12, %c0_13] : memref<64x8xf32, #tpu.memory_space<vmem>>, vector<64x8xf32>
    %c0_14 = arith.constant 0 : index
    %c0_15 = arith.constant 0 : index
    %16 = vector.load %arg7[%c0_14, %c0_15] : memref<8x128xf32, #tpu.memory_space<vmem>>, vector<8x128xf32>
    %cst_16 = arith.constant dense<0.000000e+00> : vector<64x128xf32>
    %17 = tpu.matmul %15, %16, %cst_16 {dimension_numbers = #tpu.dot_dimension_numbers<[1], [0], [0], [1], [0, 0, 1, 1], [], []>} : vector<64x8xf32>, vector<8x128xf32>, vector<64x128xf32> -> vector<64x128xf32>
    %c0_17 = arith.constant 0 : index
    %c0_18 = arith.constant 0 : index
    %18 = vector.load %arg9[%c0_17, %c0_18] : memref<1x128xf32, #tpu.memory_space<vmem>>, vector<1x128xf32>
    %19 = vector.broadcast %18 : vector<1x128xf32> to vector<64x128xf32>
    %20 = arith.addf %17, %19 : vector<64x128xf32>
    %c0_19 = arith.constant 0 : index
    %c0_20 = arith.constant 0 : index
    %21 = vector.load %arg18[%c0_19, %c0_20] : memref<64x128xf32, #tpu.memory_space<vmem>>, vector<64x128xf32>
    tpu.vector_store %arg18[%c0_19, %c0_20], %20 {strides = array<i32>} : memref<64x128xf32, #tpu.memory_space<vmem>>, vector<64x128xf32>,
    %c0_21 = arith.constant 0 : index
    %c0_22 = arith.constant 0 : index
    %22 = vector.load %arg8[%c0_21, %c0_22] : memref<32x128xf32, #tpu.memory_space<vmem>>, vector<32x128xf32>
    %c0_23 = arith.constant 0 : index
    %c0_24 = arith.constant 0 : index
    %23 = vector.load %arg2[%c0_23, %c0_24] : memref<8x1xi32, #tpu.memory_space<vmem>>, vector<8x1xi32>
    %cst_25 = arith.constant 0.000000e+00 : f32
    %24 = vector.broadcast %cst_25 : f32 to vector<8x32xf32>
    %c0_i32 = arith.constant 0 : i32
    %c8_i32 = arith.constant 8 : i32
    %25 = arith.muli %c0_i32, %c8_i32 : i32
    %26 = tpu.assume_multiple %25, 8 : i32
    %27 = arith.index_cast %26 : i32 to index
    %c0_26 = arith.constant 0 : index
    %28 = vector.load %arg18[%27, %c0_26] : memref<64x128xf32, #tpu.memory_space<vmem>>, vector<8x128xf32>
    %cst_27 = arith.constant dense<0.000000e+00> : vector<8x128xf32>
    %29 = tpu.matmul %24, %22, %cst_27 {dimension_numbers = #tpu.dot_dimension_numbers<[1], [0], [0], [1], [0, 0, 1, 1], [], []>} : vector<8x32xf32>, vector<32x128xf32>, vector<8x128xf32> -> vector<8x128xf32>
    %30 = arith.addf %28, %29 : vector<8x128xf32>
    %31 = vector.extract_strided_slice %30 {offsets = [0, 0], sizes = [8, 32], strides = [1, 1]} : vector<8x128xf32> to vector<8x32xf32>
    %32 = arith.negf %31 : vector<8x32xf32>
    %33 = math.exp %32 : vector<8x32xf32>
    %cst_28 = arith.constant 1.000000e+00 : f32
    %34 = vector.broadcast %cst_28 : f32 to vector<8x32xf32>
    %35 = arith.addf %34, %33 : vector<8x32xf32>
    %36 = arith.divf %34, %35 : vector<8x32xf32>
    %37 = vector.extract_strided_slice %30 {offsets = [0, 32], sizes = [8, 32], strides = [1, 1]} : vector<8x128xf32> to vector<8x32xf32>
    %38 = arith.negf %37 : vector<8x32xf32>
    %39 = math.exp %38 : vector<8x32xf32>
    %cst_29 = arith.constant 1.000000e+00 : f32
    %40 = vector.broadcast %cst_29 : f32 to vector<8x32xf32>
    %41 = arith.addf %40, %39 : vector<8x32xf32>
    %42 = arith.divf %40, %41 : vector<8x32xf32>
    %43 = vector.extract_strided_slice %30 {offsets = [0, 64], sizes = [8, 32], strides = [1, 1]} : vector<8x128xf32> to vector<8x32xf32>
    %44 = math.tanh %43 : vector<8x32xf32>
    %45 = vector.extract_strided_slice %30 {offsets = [0, 96], sizes = [8, 32], strides = [1, 1]} : vector<8x128xf32> to vector<8x32xf32>
    %46 = arith.negf %45 : vector<8x32xf32>
    %47 = math.exp %46 : vector<8x32xf32>
    %cst_30 = arith.constant 1.000000e+00 : f32
    %48 = vector.broadcast %cst_30 : f32 to vector<8x32xf32>
    %49 = arith.addf %48, %47 : vector<8x32xf32>
    %50 = arith.divf %48, %49 : vector<8x32xf32>
    %51 = arith.mulf %42, %24 : vector<8x32xf32>
    %52 = arith.mulf %36, %44 : vector<8x32xf32>
    %53 = arith.addf %51, %52 : vector<8x32xf32>
    %54 = math.tanh %53 : vector<8x32xf32>
    %55 = arith.mulf %50, %54 : vector<8x32xf32>
    %c1_i32 = arith.constant 1 : i32
    %56 = vector.broadcast %c1_i32 : i32 to vector<8x1xi32>
    %57 = arith.subi %23, %56 : vector<8x1xi32>
    %58 = vector.broadcast %c0_i32 : i32 to vector<8x1xi32>
    %59 = arith.cmpi eq, %57, %58 : vector<8x1xi32>
    %60 = vector.shape_cast %59 : vector<8x1xi1> to vector<8x1xi1>
    %61 = vector.broadcast %60 : vector<8x1xi1> to vector<8x32xi1>
    %62 = arith.select %61, %55, %24 : vector<8x32xi1>, vector<8x32xf32>
    %c1_i32_31 = arith.constant 1 : i32
    %c8_i32_32 = arith.constant 8 : i32
    %63 = arith.muli %c1_i32_31, %c8_i32_32 : i32
    %64 = tpu.assume_multiple %63, 8 : i32
    %65 = arith.index_cast %64 : i32 to index
    %c0_33 = arith.constant 0 : index
    %66 = vector.load %arg18[%65, %c0_33] : memref<64x128xf32, #tpu.memory_space<vmem>>, vector<8x128xf32>
    %cst_34 = arith.constant dense<0.000000e+00> : vector<8x128xf32>
    %67 = tpu.matmul %55, %22, %cst_34 {dimension_numbers = #tpu.dot_dimension_numbers<[1], [0], [0], [1], [0, 0, 1, 1], [], []>} : vector<8x32xf32>, vector<32x128xf32>, vector<8x128xf32> -> vector<8x128xf32>
    %68 = arith.addf %66, %67 : vector<8x128xf32>
    %69 = vector.extract_strided_slice %68 {offsets = [0, 0], sizes = [8, 32], strides = [1, 1]} : vector<8x128xf32> to vector<8x32xf32>
    %70 = arith.negf %69 : vector<8x32xf32>
    %71 = math.exp %70 : vector<8x32xf32>
    %cst_35 = arith.constant 1.000000e+00 : f32
    %72 = vector.broadcast %cst_35 : f32 to vector<8x32xf32>
    %73 = arith.addf %72, %71 : vector<8x32xf32>
    %74 = arith.divf %72, %73 : vector<8x32xf32>
    %75 = vector.extract_strided_slice %68 {offsets = [0, 32], sizes = [8, 32], strides = [1, 1]} : vector<8x128xf32> to vector<8x32xf32>
    %76 = arith.negf %75 : vector<8x32xf32>
    %77 = math.exp %76 : vector<8x32xf32>
    %cst_36 = arith.constant 1.000000e+00 : f32
    %78 = vector.broadcast %cst_36 : f32 to vector<8x32xf32>
    %79 = arith.addf %78, %77 : vector<8x32xf32>
    %80 = arith.divf %78, %79 : vector<8x32xf32>
    %81 = vector.extract_strided_slice %68 {offsets = [0, 64], sizes = [8, 32], strides = [1, 1]} : vector<8x128xf32> to vector<8x32xf32>
    %82 = math.tanh %81 : vector<8x32xf32>
    %83 = vector.extract_strided_slice %68 {offsets = [0, 96], sizes = [8, 32], strides = [1, 1]} : vector<8x128xf32> to vector<8x32xf32>
    %84 = arith.negf %83 : vector<8x32xf32>
    %85 = math.exp %84 : vector<8x32xf32>
    %cst_37 = arith.constant 1.000000e+00 : f32
    %86 = vector.broadcast %cst_37 : f32 to vector<8x32xf32>
    %87 = arith.addf %86, %85 : vector<8x32xf32>
    %88 = arith.divf %86, %87 : vector<8x32xf32>
    %89 = arith.mulf %80, %53 : vector<8x32xf32>
    %90 = arith.mulf %74, %82 : vector<8x32xf32>
    %91 = arith.addf %89, %90 : vector<8x32xf32>
    %92 = math.tanh %91 : vector<8x32xf32>
    %93 = arith.mulf %88, %92 : vector<8x32xf32>
    %c1_i32_38 = arith.constant 1 : i32
    %94 = vector.broadcast %c1_i32_38 : i32 to vector<8x1xi32>
    %95 = arith.subi %23, %94 : vector<8x1xi32>
    %96 = vector.broadcast %c1_i32_31 : i32 to vector<8x1xi32>
    %97 = arith.cmpi eq, %95, %96 : vector<8x1xi32>
    %98 = vector.shape_cast %97 : vector<8x1xi1> to vector<8x1xi1>
    %99 = vector.broadcast %98 : vector<8x1xi1> to vector<8x32xi1>
    %100 = arith.select %99, %93, %62 : vector<8x32xi1>, vector<8x32xf32>
    %c2_i32 = arith.constant 2 : i32
    %c8_i32_39 = arith.constant 8 : i32
    %101 = arith.muli %c2_i32, %c8_i32_39 : i32
    %102 = tpu.assume_multiple %101, 8 : i32
    %103 = arith.index_cast %102 : i32 to index
    %c0_40 = arith.constant 0 : index
    %104 = vector.load %arg18[%103, %c0_40] : memref<64x128xf32, #tpu.memory_space<vmem>>, vector<8x128xf32>
    %cst_41 = arith.constant dense<0.000000e+00> : vector<8x128xf32>
    %105 = tpu.matmul %93, %22, %cst_41 {dimension_numbers = #tpu.dot_dimension_numbers<[1], [0], [0], [1], [0, 0, 1, 1], [], []>} : vector<8x32xf32>, vector<32x128xf32>, vector<8x128xf32> -> vector<8x128xf32>
    %106 = arith.addf %104, %105 : vector<8x128xf32>
    %107 = vector.extract_strided_slice %106 {offsets = [0, 0], sizes = [8, 32], strides = [1, 1]} : vector<8x128xf32> to vector<8x32xf32>
    %108 = arith.negf %107 : vector<8x32xf32>
    %109 = math.exp %108 : vector<8x32xf32>
    %cst_42 = arith.constant 1.000000e+00 : f32
    %110 = vector.broadcast %cst_42 : f32 to vector<8x32xf32>
    %111 = arith.addf %110, %109 : vector<8x32xf32>
    %112 = arith.divf %110, %111 : vector<8x32xf32>
    %113 = vector.extract_strided_slice %106 {offsets = [0, 32], sizes = [8, 32], strides = [1, 1]} : vector<8x128xf32> to vector<8x32xf32>
    %114 = arith.negf %113 : vector<8x32xf32>
    %115 = math.exp %114 : vector<8x32xf32>
    %cst_43 = arith.constant 1.000000e+00 : f32
    %116 = vector.broadcast %cst_43 : f32 to vector<8x32xf32>
    %117 = arith.addf %116, %115 : vector<8x32xf32>
    %118 = arith.divf %116, %117 : vector<8x32xf32>
    %119 = vector.extract_strided_slice %106 {offsets = [0, 64], sizes = [8, 32], strides = [1, 1]} : vector<8x128xf32> to vector<8x32xf32>
    %120 = math.tanh %119 : vector<8x32xf32>
    %121 = vector.extract_strided_slice %106 {offsets = [0, 96], sizes = [8, 32], strides = [1, 1]} : vector<8x128xf32> to vector<8x32xf32>
    %122 = arith.negf %121 : vector<8x32xf32>
    %123 = math.exp %122 : vector<8x32xf32>
    %cst_44 = arith.constant 1.000000e+00 : f32
    %124 = vector.broadcast %cst_44 : f32 to vector<8x32xf32>
    %125 = arith.addf %124, %123 : vector<8x32xf32>
    %126 = arith.divf %124, %125 : vector<8x32xf32>
    %127 = arith.mulf %118, %91 : vector<8x32xf32>
    %128 = arith.mulf %112, %120 : vector<8x32xf32>
    %129 = arith.addf %127, %128 : vector<8x32xf32>
    %130 = math.tanh %129 : vector<8x32xf32>
    %131 = arith.mulf %126, %130 : vector<8x32xf32>
    %c1_i32_45 = arith.constant 1 : i32
    %132 = vector.broadcast %c1_i32_45 : i32 to vector<8x1xi32>
    %133 = arith.subi %23, %132 : vector<8x1xi32>
    %134 = vector.broadcast %c2_i32 : i32 to vector<8x1xi32>
    %135 = arith.cmpi eq, %133, %134 : vector<8x1xi32>
    %136 = vector.shape_cast %135 : vector<8x1xi1> to vector<8x1xi1>
    %137 = vector.broadcast %136 : vector<8x1xi1> to vector<8x32xi1>
    %138 = arith.select %137, %131, %100 : vector<8x32xi1>, vector<8x32xf32>
    %c3_i32 = arith.constant 3 : i32
    %c8_i32_46 = arith.constant 8 : i32
    %139 = arith.muli %c3_i32, %c8_i32_46 : i32
    %140 = tpu.assume_multiple %139, 8 : i32
    %141 = arith.index_cast %140 : i32 to index
    %c0_47 = arith.constant 0 : index
    %142 = vector.load %arg18[%141, %c0_47] : memref<64x128xf32, #tpu.memory_space<vmem>>, vector<8x128xf32>
    %cst_48 = arith.constant dense<0.000000e+00> : vector<8x128xf32>
    %143 = tpu.matmul %131, %22, %cst_48 {dimension_numbers = #tpu.dot_dimension_numbers<[1], [0], [0], [1], [0, 0, 1, 1], [], []>} : vector<8x32xf32>, vector<32x128xf32>, vector<8x128xf32> -> vector<8x128xf32>
    %144 = arith.addf %142, %143 : vector<8x128xf32>
    %145 = vector.extract_strided_slice %144 {offsets = [0, 0], sizes = [8, 32], strides = [1, 1]} : vector<8x128xf32> to vector<8x32xf32>
    %146 = arith.negf %145 : vector<8x32xf32>
    %147 = math.exp %146 : vector<8x32xf32>
    %cst_49 = arith.constant 1.000000e+00 : f32
    %148 = vector.broadcast %cst_49 : f32 to vector<8x32xf32>
    %149 = arith.addf %148, %147 : vector<8x32xf32>
    %150 = arith.divf %148, %149 : vector<8x32xf32>
    %151 = vector.extract_strided_slice %144 {offsets = [0, 32], sizes = [8, 32], strides = [1, 1]} : vector<8x128xf32> to vector<8x32xf32>
    %152 = arith.negf %151 : vector<8x32xf32>
    %153 = math.exp %152 : vector<8x32xf32>
    %cst_50 = arith.constant 1.000000e+00 : f32
    %154 = vector.broadcast %cst_50 : f32 to vector<8x32xf32>
    %155 = arith.addf %154, %153 : vector<8x32xf32>
    %156 = arith.divf %154, %155 : vector<8x32xf32>
    %157 = vector.extract_strided_slice %144 {offsets = [0, 64], sizes = [8, 32], strides = [1, 1]} : vector<8x128xf32> to vector<8x32xf32>
    %158 = math.tanh %157 : vector<8x32xf32>
    %159 = vector.extract_strided_slice %144 {offsets = [0, 96], sizes = [8, 32], strides = [1, 1]} : vector<8x128xf32> to vector<8x32xf32>
    %160 = arith.negf %159 : vector<8x32xf32>
    %161 = math.exp %160 : vector<8x32xf32>
    %cst_51 = arith.constant 1.000000e+00 : f32
    %162 = vector.broadcast %cst_51 : f32 to vector<8x32xf32>
    %163 = arith.addf %162, %161 : vector<8x32xf32>
    %164 = arith.divf %162, %163 : vector<8x32xf32>
    %165 = arith.mulf %156, %129 : vector<8x32xf32>
    %166 = arith.mulf %150, %158 : vector<8x32xf32>
    %167 = arith.addf %165, %166 : vector<8x32xf32>
    %168 = math.tanh %167 : vector<8x32xf32>
    %169 = arith.mulf %164, %168 : vector<8x32xf32>
    %c1_i32_52 = arith.constant 1 : i32
    %170 = vector.broadcast %c1_i32_52 : i32 to vector<8x1xi32>
    %171 = arith.subi %23, %170 : vector<8x1xi32>
    %172 = vector.broadcast %c3_i32 : i32 to vector<8x1xi32>
    %173 = arith.cmpi eq, %171, %172 : vector<8x1xi32>
    %174 = vector.shape_cast %173 : vector<8x1xi1> to vector<8x1xi1>
    %175 = vector.broadcast %174 : vector<8x1xi1> to vector<8x32xi1>
    %176 = arith.select %175, %169, %138 : vector<8x32xi1>, vector<8x32xf32>
    %c4_i32 = arith.constant 4 : i32
    %c8_i32_53 = arith.constant 8 : i32
    %177 = arith.muli %c4_i32, %c8_i32_53 : i32
    %178 = tpu.assume_multiple %177, 8 : i32
    %179 = arith.index_cast %178 : i32 to index
    %c0_54 = arith.constant 0 : index
    %180 = vector.load %arg18[%179, %c0_54] : memref<64x128xf32, #tpu.memory_space<vmem>>, vector<8x128xf32>
    %cst_55 = arith.constant dense<0.000000e+00> : vector<8x128xf32>
    %181 = tpu.matmul %169, %22, %cst_55 {dimension_numbers = #tpu.dot_dimension_numbers<[1], [0], [0], [1], [0, 0, 1, 1], [], []>} : vector<8x32xf32>, vector<32x128xf32>, vector<8x128xf32> -> vector<8x128xf32>
    %182 = arith.addf %180, %181 : vector<8x128xf32>
    %183 = vector.extract_strided_slice %182 {offsets = [0, 0], sizes = [8, 32], strides = [1, 1]} : vector<8x128xf32> to vector<8x32xf32>
    %184 = arith.negf %183 : vector<8x32xf32>
    %185 = math.exp %184 : vector<8x32xf32>
    %cst_56 = arith.constant 1.000000e+00 : f32
    %186 = vector.broadcast %cst_56 : f32 to vector<8x32xf32>
    %187 = arith.addf %186, %185 : vector<8x32xf32>
    %188 = arith.divf %186, %187 : vector<8x32xf32>
    %189 = vector.extract_strided_slice %182 {offsets = [0, 32], sizes = [8, 32], strides = [1, 1]} : vector<8x128xf32> to vector<8x32xf32>
    %190 = arith.negf %189 : vector<8x32xf32>
    %191 = math.exp %190 : vector<8x32xf32>
    %cst_57 = arith.constant 1.000000e+00 : f32
    %192 = vector.broadcast %cst_57 : f32 to vector<8x32xf32>
    %193 = arith.addf %192, %191 : vector<8x32xf32>
    %194 = arith.divf %192, %193 : vector<8x32xf32>
    %195 = vector.extract_strided_slice %182 {offsets = [0, 64], sizes = [8, 32], strides = [1, 1]} : vector<8x128xf32> to vector<8x32xf32>
    %196 = math.tanh %195 : vector<8x32xf32>
    %197 = vector.extract_strided_slice %182 {offsets = [0, 96], sizes = [8, 32], strides = [1, 1]} : vector<8x128xf32> to vector<8x32xf32>
    %198 = arith.negf %197 : vector<8x32xf32>
    %199 = math.exp %198 : vector<8x32xf32>
    %cst_58 = arith.constant 1.000000e+00 : f32
    %200 = vector.broadcast %cst_58 : f32 to vector<8x32xf32>
    %201 = arith.addf %200, %199 : vector<8x32xf32>
    %202 = arith.divf %200, %201 : vector<8x32xf32>
    %203 = arith.mulf %194, %167 : vector<8x32xf32>
    %204 = arith.mulf %188, %196 : vector<8x32xf32>
    %205 = arith.addf %203, %204 : vector<8x32xf32>
    %206 = math.tanh %205 : vector<8x32xf32>
    %207 = arith.mulf %202, %206 : vector<8x32xf32>
    %c1_i32_59 = arith.constant 1 : i32
    %208 = vector.broadcast %c1_i32_59 : i32 to vector<8x1xi32>
    %209 = arith.subi %23, %208 : vector<8x1xi32>
    %210 = vector.broadcast %c4_i32 : i32 to vector<8x1xi32>
    %211 = arith.cmpi eq, %209, %210 : vector<8x1xi32>
    %212 = vector.shape_cast %211 : vector<8x1xi1> to vector<8x1xi1>
    %213 = vector.broadcast %212 : vector<8x1xi1> to vector<8x32xi1>
    %214 = arith.select %213, %207, %176 : vector<8x32xi1>, vector<8x32xf32>
    %c5_i32 = arith.constant 5 : i32
    %c8_i32_60 = arith.constant 8 : i32
    %215 = arith.muli %c5_i32, %c8_i32_60 : i32
    %216 = tpu.assume_multiple %215, 8 : i32
    %217 = arith.index_cast %216 : i32 to index
    %c0_61 = arith.constant 0 : index
    %218 = vector.load %arg18[%217, %c0_61] : memref<64x128xf32, #tpu.memory_space<vmem>>, vector<8x128xf32>
    %cst_62 = arith.constant dense<0.000000e+00> : vector<8x128xf32>
    %219 = tpu.matmul %207, %22, %cst_62 {dimension_numbers = #tpu.dot_dimension_numbers<[1], [0], [0], [1], [0, 0, 1, 1], [], []>} : vector<8x32xf32>, vector<32x128xf32>, vector<8x128xf32> -> vector<8x128xf32>
    %220 = arith.addf %218, %219 : vector<8x128xf32>
    %221 = vector.extract_strided_slice %220 {offsets = [0, 0], sizes = [8, 32], strides = [1, 1]} : vector<8x128xf32> to vector<8x32xf32>
    %222 = arith.negf %221 : vector<8x32xf32>
    %223 = math.exp %222 : vector<8x32xf32>
    %cst_63 = arith.constant 1.000000e+00 : f32
    %224 = vector.broadcast %cst_63 : f32 to vector<8x32xf32>
    %225 = arith.addf %224, %223 : vector<8x32xf32>
    %226 = arith.divf %224, %225 : vector<8x32xf32>
    %227 = vector.extract_strided_slice %220 {offsets = [0, 32], sizes = [8, 32], strides = [1, 1]} : vector<8x128xf32> to vector<8x32xf32>
    %228 = arith.negf %227 : vector<8x32xf32>
    %229 = math.exp %228 : vector<8x32xf32>
    %cst_64 = arith.constant 1.000000e+00 : f32
    %230 = vector.broadcast %cst_64 : f32 to vector<8x32xf32>
    %231 = arith.addf %230, %229 : vector<8x32xf32>
    %232 = arith.divf %230, %231 : vector<8x32xf32>
    %233 = vector.extract_strided_slice %220 {offsets = [0, 64], sizes = [8, 32], strides = [1, 1]} : vector<8x128xf32> to vector<8x32xf32>
    %234 = math.tanh %233 : vector<8x32xf32>
    %235 = vector.extract_strided_slice %220 {offsets = [0, 96], sizes = [8, 32], strides = [1, 1]} : vector<8x128xf32> to vector<8x32xf32>
    %236 = arith.negf %235 : vector<8x32xf32>
    %237 = math.exp %236 : vector<8x32xf32>
    %cst_65 = arith.constant 1.000000e+00 : f32
    %238 = vector.broadcast %cst_65 : f32 to vector<8x32xf32>
    %239 = arith.addf %238, %237 : vector<8x32xf32>
    %240 = arith.divf %238, %239 : vector<8x32xf32>
    %241 = arith.mulf %232, %205 : vector<8x32xf32>
    %242 = arith.mulf %226, %234 : vector<8x32xf32>
    %243 = arith.addf %241, %242 : vector<8x32xf32>
    %244 = math.tanh %243 : vector<8x32xf32>
    %245 = arith.mulf %240, %244 : vector<8x32xf32>
    %c1_i32_66 = arith.constant 1 : i32
    %246 = vector.broadcast %c1_i32_66 : i32 to vector<8x1xi32>
    %247 = arith.subi %23, %246 : vector<8x1xi32>
    %248 = vector.broadcast %c5_i32 : i32 to vector<8x1xi32>
    %249 = arith.cmpi eq, %247, %248 : vector<8x1xi32>
    %250 = vector.shape_cast %249 : vector<8x1xi1> to vector<8x1xi1>
    %251 = vector.broadcast %250 : vector<8x1xi1> to vector<8x32xi1>
    %252 = arith.select %251, %245, %214 : vector<8x32xi1>, vector<8x32xf32>
    %c6_i32 = arith.constant 6 : i32
    %c8_i32_67 = arith.constant 8 : i32
    %253 = arith.muli %c6_i32, %c8_i32_67 : i32
    %254 = tpu.assume_multiple %253, 8 : i32
    %255 = arith.index_cast %254 : i32 to index
    %c0_68 = arith.constant 0 : index
    %256 = vector.load %arg18[%255, %c0_68] : memref<64x128xf32, #tpu.memory_space<vmem>>, vector<8x128xf32>
    %cst_69 = arith.constant dense<0.000000e+00> : vector<8x128xf32>
    %257 = tpu.matmul %245, %22, %cst_69 {dimension_numbers = #tpu.dot_dimension_numbers<[1], [0], [0], [1], [0, 0, 1, 1], [], []>} : vector<8x32xf32>, vector<32x128xf32>, vector<8x128xf32> -> vector<8x128xf32>
    %258 = arith.addf %256, %257 : vector<8x128xf32>
    %259 = vector.extract_strided_slice %258 {offsets = [0, 0], sizes = [8, 32], strides = [1, 1]} : vector<8x128xf32> to vector<8x32xf32>
    %260 = arith.negf %259 : vector<8x32xf32>
    %261 = math.exp %260 : vector<8x32xf32>
    %cst_70 = arith.constant 1.000000e+00 : f32
    %262 = vector.broadcast %cst_70 : f32 to vector<8x32xf32>
    %263 = arith.addf %262, %261 : vector<8x32xf32>
    %264 = arith.divf %262, %263 : vector<8x32xf32>
    %265 = vector.extract_strided_slice %258 {offsets = [0, 32], sizes = [8, 32], strides = [1, 1]} : vector<8x128xf32> to vector<8x32xf32>
    %266 = arith.negf %265 : vector<8x32xf32>
    %267 = math.exp %266 : vector<8x32xf32>
    %cst_71 = arith.constant 1.000000e+00 : f32
    %268 = vector.broadcast %cst_71 : f32 to vector<8x32xf32>
    %269 = arith.addf %268, %267 : vector<8x32xf32>
    %270 = arith.divf %268, %269 : vector<8x32xf32>
    %271 = vector.extract_strided_slice %258 {offsets = [0, 64], sizes = [8, 32], strides = [1, 1]} : vector<8x128xf32> to vector<8x32xf32>
    %272 = math.tanh %271 : vector<8x32xf32>
    %273 = vector.extract_strided_slice %258 {offsets = [0, 96], sizes = [8, 32], strides = [1, 1]} : vector<8x128xf32> to vector<8x32xf32>
    %274 = arith.negf %273 : vector<8x32xf32>
    %275 = math.exp %274 : vector<8x32xf32>
    %cst_72 = arith.constant 1.000000e+00 : f32
    %276 = vector.broadcast %cst_72 : f32 to vector<8x32xf32>
    %277 = arith.addf %276, %275 : vector<8x32xf32>
    %278 = arith.divf %276, %277 : vector<8x32xf32>
    %279 = arith.mulf %270, %243 : vector<8x32xf32>
    %280 = arith.mulf %264, %272 : vector<8x32xf32>
    %281 = arith.addf %279, %280 : vector<8x32xf32>
    %282 = math.tanh %281 : vector<8x32xf32>
    %283 = arith.mulf %278, %282 : vector<8x32xf32>
    %c1_i32_73 = arith.constant 1 : i32
    %284 = vector.broadcast %c1_i32_73 : i32 to vector<8x1xi32>
    %285 = arith.subi %23, %284 : vector<8x1xi32>
    %286 = vector.broadcast %c6_i32 : i32 to vector<8x1xi32>
    %287 = arith.cmpi eq, %285, %286 : vector<8x1xi32>
    %288 = vector.shape_cast %287 : vector<8x1xi1> to vector<8x1xi1>
    %289 = vector.broadcast %288 : vector<8x1xi1> to vector<8x32xi1>
    %290 = arith.select %289, %283, %252 : vector<8x32xi1>, vector<8x32xf32>
    %c7_i32 = arith.constant 7 : i32
    %c8_i32_74 = arith.constant 8 : i32
    %291 = arith.muli %c7_i32, %c8_i32_74 : i32
    %292 = tpu.assume_multiple %291, 8 : i32
    %293 = arith.index_cast %292 : i32 to index
    %c0_75 = arith.constant 0 : index
    %294 = vector.load %arg18[%293, %c0_75] : memref<64x128xf32, #tpu.memory_space<vmem>>, vector<8x128xf32>
    %cst_76 = arith.constant dense<0.000000e+00> : vector<8x128xf32>
    %295 = tpu.matmul %283, %22, %cst_76 {dimension_numbers = #tpu.dot_dimension_numbers<[1], [0], [0], [1], [0, 0, 1, 1], [], []>} : vector<8x32xf32>, vector<32x128xf32>, vector<8x128xf32> -> vector<8x128xf32>
    %296 = arith.addf %294, %295 : vector<8x128xf32>
    %297 = vector.extract_strided_slice %296 {offsets = [0, 0], sizes = [8, 32], strides = [1, 1]} : vector<8x128xf32> to vector<8x32xf32>
    %298 = arith.negf %297 : vector<8x32xf32>
    %299 = math.exp %298 : vector<8x32xf32>
    %cst_77 = arith.constant 1.000000e+00 : f32
    %300 = vector.broadcast %cst_77 : f32 to vector<8x32xf32>
    %301 = arith.addf %300, %299 : vector<8x32xf32>
    %302 = arith.divf %300, %301 : vector<8x32xf32>
    %303 = vector.extract_strided_slice %296 {offsets = [0, 32], sizes = [8, 32], strides = [1, 1]} : vector<8x128xf32> to vector<8x32xf32>
    %304 = arith.negf %303 : vector<8x32xf32>
    %305 = math.exp %304 : vector<8x32xf32>
    %cst_78 = arith.constant 1.000000e+00 : f32
    %306 = vector.broadcast %cst_78 : f32 to vector<8x32xf32>
    %307 = arith.addf %306, %305 : vector<8x32xf32>
    %308 = arith.divf %306, %307 : vector<8x32xf32>
    %309 = vector.extract_strided_slice %296 {offsets = [0, 64], sizes = [8, 32], strides = [1, 1]} : vector<8x128xf32> to vector<8x32xf32>
    %310 = math.tanh %309 : vector<8x32xf32>
    %311 = vector.extract_strided_slice %296 {offsets = [0, 96], sizes = [8, 32], strides = [1, 1]} : vector<8x128xf32> to vector<8x32xf32>
    %312 = arith.negf %311 : vector<8x32xf32>
    %313 = math.exp %312 : vector<8x32xf32>
    %cst_79 = arith.constant 1.000000e+00 : f32
    %314 = vector.broadcast %cst_79 : f32 to vector<8x32xf32>
    %315 = arith.addf %314, %313 : vector<8x32xf32>
    %316 = arith.divf %314, %315 : vector<8x32xf32>
    %317 = arith.mulf %308, %281 : vector<8x32xf32>
    %318 = arith.mulf %302, %310 : vector<8x32xf32>
    %319 = arith.addf %317, %318 : vector<8x32xf32>
    %320 = math.tanh %319 : vector<8x32xf32>
    %321 = arith.mulf %316, %320 : vector<8x32xf32>
    %c1_i32_80 = arith.constant 1 : i32
    %322 = vector.broadcast %c1_i32_80 : i32 to vector<8x1xi32>
    %323 = arith.subi %23, %322 : vector<8x1xi32>
    %324 = vector.broadcast %c7_i32 : i32 to vector<8x1xi32>
    %325 = arith.cmpi eq, %323, %324 : vector<8x1xi32>
    %326 = vector.shape_cast %325 : vector<8x1xi1> to vector<8x1xi1>
    %327 = vector.broadcast %326 : vector<8x1xi1> to vector<8x32xi1>
    %328 = arith.select %327, %321, %290 : vector<8x32xi1>, vector<8x32xf32>
    %c8_i32_81 = arith.constant 8 : i32
    %c0_82 = arith.constant 0 : index
    %c0_83 = arith.constant 0 : index
    %329 = vector.load %arg10[%c0_82, %c0_83] : memref<16x64xf32, #tpu.memory_space<vmem>>, vector<16x64xf32>
    %cst_84 = arith.constant dense<0.000000e+00> : vector<8x64xf32>
    %330 = tpu.matmul %14, %329, %cst_84 {dimension_numbers = #tpu.dot_dimension_numbers<[1], [0], [0], [1], [0, 0, 1, 1], [], []>} : vector<8x16xf32>, vector<16x64xf32>, vector<8x64xf32> -> vector<8x64xf32>
    %c0_85 = arith.constant 0 : index
    %c0_86 = arith.constant 0 : index
    %331 = vector.load %arg11[%c0_85, %c0_86] : memref<32x64xf32, #tpu.memory_space<vmem>>, vector<32x64xf32>
    %cst_87 = arith.constant dense<0.000000e+00> : vector<8x64xf32>
    %332 = tpu.matmul %328, %331, %cst_87 {dimension_numbers = #tpu.dot_dimension_numbers<[1], [0], [0], [1], [0, 0, 1, 1], [], []>} : vector<8x32xf32>, vector<32x64xf32>, vector<8x64xf32> -> vector<8x64xf32>
    %333 = arith.addf %330, %332 : vector<8x64xf32>
    %c0_88 = arith.constant 0 : index
    %c0_89 = arith.constant 0 : index
    %334 = vector.load %arg12[%c0_88, %c0_89] : memref<1x64xf32, #tpu.memory_space<vmem>>, vector<1x64xf32>
    %335 = vector.broadcast %334 : vector<1x64xf32> to vector<8x64xf32>
    %336 = arith.addf %333, %335 : vector<8x64xf32>
    %cst_90 = arith.constant 0.000000e+00 : f32
    %337 = vector.broadcast %cst_90 : f32 to vector<8x64xf32>
    %338 = arith.maximumf %336, %337 : vector<8x64xf32>
    %c0_91 = arith.constant 0 : index
    %c0_92 = arith.constant 0 : index
    %339 = vector.load %arg13[%c0_91, %c0_92] : memref<64x64xf32, #tpu.memory_space<vmem>>, vector<64x64xf32>
    %cst_93 = arith.constant dense<0.000000e+00> : vector<8x64xf32>
    %340 = tpu.matmul %338, %339, %cst_93 {dimension_numbers = #tpu.dot_dimension_numbers<[1], [0], [0], [1], [0, 0, 1, 1], [], []>} : vector<8x64xf32>, vector<64x64xf32>, vector<8x64xf32> -> vector<8x64xf32>
    %c0_94 = arith.constant 0 : index
    %c0_95 = arith.constant 0 : index
    %341 = vector.load %arg14[%c0_94, %c0_95] : memref<1x64xf32, #tpu.memory_space<vmem>>, vector<1x64xf32>
    %342 = vector.broadcast %341 : vector<1x64xf32> to vector<8x64xf32>
    %343 = arith.addf %340, %342 : vector<8x64xf32>
    %cst_96 = arith.constant 0.000000e+00 : f32
    %344 = vector.broadcast %cst_96 : f32 to vector<8x64xf32>
    %345 = arith.maximumf %343, %344 : vector<8x64xf32>
    %c0_97 = arith.constant 0 : index
    %c0_98 = arith.constant 0 : index
    %346 = vector.load %arg15[%c0_97, %c0_98] : memref<64x2xf32, #tpu.memory_space<vmem>>, vector<64x2xf32>
    %cst_99 = arith.constant dense<0.000000e+00> : vector<8x2xf32>
    %347 = tpu.matmul %345, %346, %cst_99 {dimension_numbers = #tpu.dot_dimension_numbers<[1], [0], [0], [1], [0, 0, 1, 1], [], []>} : vector<8x64xf32>, vector<64x2xf32>, vector<8x2xf32> -> vector<8x2xf32>
    %c0_100 = arith.constant 0 : index
    %c0_101 = arith.constant 0 : index
    %348 = vector.load %arg16[%c0_100, %c0_101] : memref<1x2xf32, #tpu.memory_space<vmem>>, vector<1x2xf32>
    %349 = vector.broadcast %348 : vector<1x2xf32> to vector<8x2xf32>
    %350 = arith.addf %347, %349 : vector<8x2xf32>
    %c0_102 = arith.constant 0 : index
    %c0_103 = arith.constant 0 : index
    %351 = vector.load %arg17[%c0_102, %c0_103] : memref<8x2xf32, #tpu.memory_space<vmem>>, vector<8x2xf32>
    tpu.vector_store %arg17[%c0_102, %c0_103], %350 {strides = array<i32>} : memref<8x2xf32, #tpu.memory_space<vmem>>, vector<8x2xf32>,
    return
  }
}

</mosaic_0001>

<bundles_post_ra>
// kernel: tpu_custom_call.1
= control target key start
LH: loop header
LB: loop body
LE: loop exit
PB: predicated region body
PF: predicated region fallthrough
CT: control target
= control target key end

     0   :  { %vm65_vm0 = vcmask 64512   ;;  %v2075_v0 = vmov 0.0   ;;  %vm2076_vm1 = vmmov 0   ;;  %v2077_v6 = vmov 0.0|0.0   ;;  %s2524_s3 = inlined_call_operand.vmem [shape: f32[8,64], index: 3, kind: input, shape index: {}]   ;;  %s2525_s0 = inlined_call_operand.vmem [shape: f32[8,8], index: 0, kind: input, shape index: {}]   ;;  %s2526_s7 = inlined_call_operand.vmem [shape: f32[8,128], index: 7, kind: input, shape index: {}]   ;;  %s2527_s1 = inlined_call_operand.vmem [shape: f32[64,8], index: 1, kind: input, shape index: {}]   ;;  %s2528_s8 = inlined_call_operand.vmem [shape: f32[32,128], index: 8, kind: input, shape index: {}]   ;;  %s2529_s5 = inlined_call_operand.vmem [shape: f32[64,16], index: 5, kind: input, shape index: {}]   ;;  %s2530_s4 = inlined_call_operand.vmem [shape: f32[1,64], index: 4, kind: input, shape index: {}]   ;;  %s2531_s9 = inlined_call_operand.vmem [shape: f32[1,128], index: 9, kind: input, shape index: {}]   ;;  %s2532_s10 = inlined_call_operand.vmem [shape: f32[16,64], index: 10, kind: input, shape index: {}]   ;;  %s2533_s6 = inlined_call_operand.vmem [shape: f32[1,16], index: 6, kind: input, shape index: {}]   ;;  %s2534_s2 = inlined_call_operand.vmem [shape: s32[8,1], index: 2, kind: input, shape index: {}]   ;;  %s2535_s11 = inlined_call_operand.vmem [shape: f32[32,64], index: 11, kind: input, shape index: {}]   ;;  %s2536_s13 = inlined_call_operand.vmem [shape: f32[64,64], index: 13, kind: input, shape index: {}]   ;;  %s2537_s15 = inlined_call_operand.vmem [shape: f32[64,2], index: 15, kind: input, shape index: {}]   ;;  %s2538_s12 = inlined_call_operand.vmem [shape: f32[1,64], index: 12, kind: input, shape index: {}]   ;;  %s2539_s14 = inlined_call_operand.vmem [shape: f32[1,64], index: 14, kind: input, shape index: {}]   ;;  %s2540_s16 = inlined_call_operand.vmem [shape: f32[1,2], index: 16, kind: input, shape index: {}]   ;;  %s2541_s17 = inlined_call_operand.vmem [shape: f32[8,2], index: 17, kind: output, shape index: {}]  }
   0x1   :  { %2542 = sst [smem:[#allocation3_spill]] %s2524_s3  ;;  %1728 = vmatprep.subr.mxu0 %v2075_v0  ;;  %1730 = vmatprep.mubr.msk.f32.mxu0 %vm2076_vm1, %v2075_v0  ;;  %v238_v3 = vld [vmem:[%s2526_s7] sm:$0xff]  ;;  %v384_v7 = vld [vmem:[%s2528_s8 + $0x8] sm:$0xff]  ;;  %v232_v10 = vld [vmem:[%s2527_s1 + $0x10] sm:$0xff]  ;;  %vm155_vm2 = vcmask 523264   ;;  %vm389_vm3 = vcmask 261120  }
   0x2   :  { %2543 = sst [smem:[#allocation4_spill]] %s2525_s0  ;;  %s2544_s26 = sld [smem:[#allocation3_spill]]  ;;  %v230_v4 = vld [vmem:[%s2527_s1] sm:$0xff]  ;;  %1910 = vmatprep.subr.bf16.mxu1 %v2077_v6  ;;  %v231_v8 = vld [vmem:[%s2527_s1 + $0x8] sm:$0xff]  ;;  %v385_v11 = vld [vmem:[%s2528_s8 + $0x10] sm:$0xff]  ;;  %1749 = vmatprep.mubr.msk.f32.mxu1 %vm2076_vm1, %v2075_v0  ;;  %vm1340_vm4 = vcmask 130048  }
   0x3   :  { %s2545_s29 = sld [smem:[#allocation4_spill]]  ;;  %v383_v5 = vld [vmem:[%s2528_s8] sm:$0xff]  ;;  %v386_v12 = vld [vmem:[%s2528_s8 + $0x18] sm:$0xff]  ;;  %v141_v14 = vld [vmem:[%s2529_s5 + $0x8] sm:$0xff] }
   0x4   :  { %v2198_v9 = vpack.c.bf16 %v384_v7, %v383_v5  ;;  %v140_v13 = vld [vmem:[%s2529_s5] sm:$0xff]  ;;  %v142_v15 = vld [vmem:[%s2529_s5 + $0x10] sm:$0xff]  ;;  %v143_v17 = vld [vmem:[%s2529_s5 + $0x18] sm:$0xff]  ;;  %v2230_v19 = vpack.c.bf16 %v386_v12, %v385_v11 }
   0x5   :  { %v1911_v16 = vpack.c.bf16 %v141_v14, %v140_v13  ;;  %v233_v18 = vld [vmem:[%s2527_s1 + $0x18] sm:$0xff]  ;;  %v234_v20 = vld [vmem:[%s2527_s1 + $0x20] sm:$0xff]  ;;  %v1914_v21 = vpack.c.bf16 %v143_v17, %v142_v15  ;;  %v145_v23 = vld [vmem:[%s2529_s5 + $0x28] sm:$0xff] }
   0x6   :  { %v144_v22 = vld [vmem:[%s2529_s5 + $0x20] sm:$0xff]  ;;  %v235_v24 = vld [vmem:[%s2527_s1 + $0x28] sm:$0xff]  ;;  %v236_v25 = vld [vmem:[%s2527_s1 + $0x30] sm:$0xff] }
   0x7   :  { %1912 = vmatpush3.bf16.msra.mxu1 %v1911_v16  ;;  %v1917_v26 = vpack.c.bf16 %v145_v23, %v144_v22  ;;  %v237_v27 = vld [vmem:[%s2527_s1 + $0x38] sm:$0xff]  ;;  %v146_v28 = vld [vmem:[%s2529_s5 + $0x30] sm:$0xff]  ;;  %v1606_v31 = vld [vmem:[%s2530_s4] ss:$0 sm:$0xff]  ;;  %s2078_s4 = smov 64  }
   0x8   :  { %v57_v1 = vld [vmem:[%s2544_s26] sm:$0xff]  ;;  %1913 = vmatprep.subr.bf16.mxu1 %v2077_v6  ;;  %v147_v29 = vld [vmem:[%s2529_s5 + $0x38] sm:$0xff]  ;;  %s2079_s5 = smov 32  }
   0x9   :  { %v56_v2 = vld [vmem:[%s2545_s29] sm:$0xff]  ;;  %1729 = vmatpush3.msra.mxu0 %v57_v1  ;;  %v1920_v30 = vpack.c.bf16 %v147_v29, %v146_v28 }
   0xa   :  { %1731 = vmatmul.mubr.msk.f32.vlgmr.msra.gmra.mrb[0].mxu0 %vm65_vm0, %v56_v2  ;;  %1752 = vmatprep.subr.mxu0 %v238_v3  ;;  %v1610_v35 = vld [vmem:[%s2531_s9] ss:$0 sm:$0xff] }
   0xb   :  { %1753 = vmatpush3.msra.mxu0 %v238_v3  ;;  %1754 = vmatprep.mubr.msk.f32.mxu0 %vm65_vm0, %v230_v4 }
   0xc   :  { %1922 = vmatprep.subr.bf16.mxu0 %v2077_v6  ;;  %1915 = vmatpush3.bf16.msra.mxu1 %v1914_v21 }
   0xd   :  { %1916 = vmatprep.subr.bf16.mxu1 %v2077_v6 }
   0xe   :  { %1755 = vmatmul.mubr.msk.f32.vlgmr.msra.gmra.mrb[2].mxu0 %vm65_vm0, %v231_v8 }
   0xf   :  { %1924 = vmatpush3.bf16.msra.mxu0 %v2198_v9  ;;  %1757 = vmatprep.mubr.msk.f32.mxu0 %vm65_vm0, %v232_v10 }
  0x10   :  { %1925 = vmatprep.subr.bf16.mxu0 %v2077_v6  ;;  %1918 = vmatpush3.bf16.msra.mxu1 %v1917_v26 }
  0x11   :  { %1919 = vmatprep.subr.bf16.mxu1 %v2077_v6 }
  0x12   :  { %1758 = vmatmul.mubr.msk.f32.gmra.mrb[4].mxu0 %vm65_vm0, %v233_v18 }
  0x13   :  { %1760 = vmatprep.mubr.msk.f32.mxu0 %vm65_vm0, %v234_v20  ;;  %1927 = vmatpush3.bf16.msra.mxu0 %v2230_v19 }
  0x14   :  { %1934 = vmatprep.subr.bf16.mxu0 %v2077_v6  ;;  %1921 = vmatpush3.bf16.msra.mxu1 %v1920_v30 }
  0x15   :  { %1928 = vmatprep.subr.bf16.mxu1 %v2077_v6 }
  0x16   :  { %1761 = vmatmul.mubr.msk.f32.gmra.mrb[6].mxu0 %vm65_vm0, %v235_v24 }
  0x17   :  { %1763 = vmatprep.mubr.msk.f32.mxu0 %vm65_vm0, %v236_v25 }
  0x1a   :  { %1764 = vmatmul.mubr.msk.f32.gmra.mrb[8].mxu0 %vm65_vm0, %v237_v27 }
  0x1b   :  { %1774 = vmatprep.mubr.msk.f32.mxu0 %vm2076_vm1, %v2075_v0 }
  0x1e   :  { %1775 = vmatmul.mubr.f32.vlgmr.msra.gmra.mrb[10].mxu0 %v2075_v0 }
  0x1f   :  { %1936 = vmatpush3.bf16.msra.mxu0 %v2198_v9  ;;  %1796 = vmatprep.mubr.msk.f32.mxu0 %vm2076_vm1, %v2075_v0 }
  0x20   :  { %1937 = vmatprep.subr.bf16.mxu0 %v2077_v6 }
  0x23   :  { %1939 = vmatpush3.bf16.msra.mxu0 %v2230_v19 }
  0x24   :  { %1946 = vmatprep.subr.bf16.mxu0 %v2077_v6 }
  0xdd   :  { %v135_v32 = vpop.f32.mrb[0].mxu0 }
  0xde   :  { %v136_v33 = vadd.f32 %v1606_v31, %v135_v32  ;;  %v1732_v34 = vpop.f32.mrb[1].mxu0 }
  0xe0   :  { %v139_v36 = vmax.f32 %v136_v33, 0.0 }
  0xe1   :  { %v1756_v37 = vpop.f32.mrb[2].mxu0 }
  0xe2   :  { %v342_v38 = vadd.f32 %v1756_v37, %v1610_v35  ;;  %1750 = vmatmul.mubr.msk.f32.vlgmr.msra.gmra.mrb[0].mxu1 %vm155_vm2, %v139_v36  ;;  %v336_v39 = vpop.f32.mrb[3].mxu0 }
  0xe3   :  { %1930 = vmatpush3.bf16.msra.mxu1 %v2198_v9  ;;  %1785 = vmatprep.mubr.msk.f32.mxu1 %vm2076_vm1, %v2075_v0  ;;  %v337_v52 = vadd.f32 %v1610_v35, %v336_v39 }
  0xe4   :  { %1931 = vmatprep.subr.bf16.mxu1 %v2077_v6 }
  0xe5   :  { %v1759_v40 = vpop.f32.mrb[4].mxu0 }
  0xe6   :  { %v2288_v41 = vadd.f32 %v1759_v40, %v1610_v35  ;;  %v346_v42 = vpop.f32.mrb[5].mxu0 }
  0xe7   :  { %v2290_v43 = vadd.f32 %v1610_v35, %v346_v42  ;;  %1933 = vmatpush3.bf16.msra.mxu1 %v2230_v19 }
  0xe8   :  { %1940 = vmatprep.subr.bf16.mxu1 %v2077_v6 }
  0xe9   :  { %v1762_v44 = vpop.f32.mrb[6].mxu0 }
  0xea   :  { %v2294_v45 = vadd.f32 %v1762_v44, %v1610_v35  ;;  %v356_v46 = vpop.f32.mrb[7].mxu0 }
  0xeb   :  { %v2296_v47 = vadd.f32 %v1610_v35, %v356_v46 }
  0xed   :  { %v1765_v48 = vpop.f32.mrb[8].mxu0 }
  0xee   :  { %v2298_v49 = vadd.f32 %v1765_v48, %v1610_v35  ;;  %v366_v50 = vpop.f32.mrb[9].mxu0 }
  0xef   :  { %v2300_v51 = vadd.f32 %v1610_v35, %v366_v50 }
  0xf1   :  { %v459_v53 = vpop.f32.mrb[10].mxu0 }
  0xf2   :  { %v463_v54 = vadd.f32 %v459_v53, %v337_v52  ;;  %v1776_v55 = vpop.f32.mrb[11].mxu0 }
  0xf4   :  { %2011 = vtanh.f32 %v463_v54  ;;  %v1619_v57 = vmul.f32 -1.442695, %v463_v54 }
  0xf6   :  { %2013 = vpow2.f32 %v1619_v57 }
  0xfe   :  { %v2012_v56 = vpop.eup %2011 }
  0xff   :  { %473 = vrot.lane.b32.xlu0 %v2012_v56, %s2078_s4 }
 0x100   :  { %v2014_v58 = vpop.eup %2013 }
 0x101   :  { %v467_v59 = vadd.f32 1.0, %v2014_v58 }
 0x103   :  { %2015 = vrcp.f32 %v467_v59 }
 0x10d   :  { %v2016_v60 = vpop.eup %2015 }
 0x10e   :  { %v471_v2 = vmul.f32 0.0, %v2016_v60 }
 0x171   :  { %v474_v61 = vpop.permute.xlu0 %473 }
 0x172   :  { %v476_v62 = vmul.f32 %v2016_v60, %v474_v61 }
 0x174   :  { %478 = vrot.lane.b32.xlu0 %v476_v62, %s2079_s5 }
 0x1b5   :  { %v2304_v63 = vpop.f32.mrb[0].mxu1 }
 0x1b6   :  { %v1751_v1 = vpop.f32.mrb[1].mxu1 }
 0x1e6   :  { %v479_v3 = vpop.permute.xlu0 %478 }
 0x1e7   :  { %v481_v4 = vadd.f32 %v479_v3, %v471_v2 }
 0x1e9   :  { %2017 = vtanh.f32 %v481_v4 }
 0x1f3   :  { %v2018_v5 = vpop.eup %2017 }
 0x1f4   :  { %484 = vrot.lane.b32.xlu1 %v2018_v5, %s2078_s4 }
 0x266   :  { %v485_v7 = vpop.permute.xlu1 %484 }
 0x267   :  { %v2307_v8 = vmul.f32 %v2016_v60, %v485_v7 }
 0x269   :  { %499 = vrot.lane.b32.xlu1 %v2307_v8, %s2079_s5 }
 0x2db   :  { %v500_v10 = vpop.permute.xlu1 %499 }
 0x2dc   :  { %1786 = vmatmul.mubr.msk.f32.vlgmr.msra.gmra.mrb[2].mxu1 %vm389_vm3, %v500_v10 }
 0x2dd   :  { %1942 = vmatpush3.bf16.msra.mxu1 %v2198_v9  ;;  %1807 = vmatprep.mubr.msk.f32.mxu1 %vm2076_vm1, %v2075_v0 }
 0x2de   :  { %1943 = vmatprep.subr.bf16.mxu1 %v2077_v6 }
 0x2e1   :  { %1945 = vmatpush3.bf16.msra.mxu1 %v2230_v19 }
 0x2e2   :  { %1952 = vmatprep.subr.bf16.mxu1 %v2077_v6 }
 0x3af   :  { %v569_v11 = vpop.f32.mrb[2].mxu1 }
 0x3b0   :  { %v573_v12 = vadd.f32 %v569_v11, %v342_v38  ;;  %v1787_v13 = vpop.f32.mrb[3].mxu1 }
 0x3b2   :  { %2019 = vtanh.f32 %v573_v12  ;;  %v1622_v15 = vmul.f32 -1.442695, %v573_v12 }
 0x3b4   :  { %2021 = vpow2.f32 %v1622_v15 }
 0x3bc   :  { %v2020_v14 = vpop.eup %2019 }
 0x3bd   :  { %583 = vrot.lane.b32.xlu0 %v2020_v14, %s2078_s4 }
 0x3be   :  { %v2022_v16 = vpop.eup %2021 }
 0x3bf   :  { %v577_v17 = vadd.f32 1.0, %v2022_v16 }
 0x3c1   :  { %2023 = vrcp.f32 %v577_v17 }
 0x3cb   :  { %v2024_v18 = vpop.eup %2023 }
 0x3cc   :  { %v581_v22 = vmul.f32 %v2024_v18, %v481_v4 }
 0x42f   :  { %v584_v20 = vpop.permute.xlu0 %583 }
 0x430   :  { %v586_v21 = vmul.f32 %v2024_v18, %v584_v20 }
 0x432   :  { %588 = vrot.lane.b32.xlu1 %v586_v21, %s2079_s5 }
 0x4a4   :  { %v589_v23 = vpop.permute.xlu1 %588 }
 0x4a5   :  { %v591_v24 = vadd.f32 %v589_v23, %v581_v22 }
 0x4a7   :  { %2025 = vtanh.f32 %v591_v24 }
 0x4b1   :  { %v2026_v25 = vpop.eup %2025 }
 0x4b2   :  { %594 = vrot.lane.b32.xlu0 %v2026_v25, %s2078_s4 }
 0x524   :  { %v595_v26 = vpop.permute.xlu0 %594 }
 0x525   :  { %v2321_v27 = vmul.f32 %v2024_v18, %v595_v26 }
 0x527   :  { %608 = vrot.lane.b32.xlu1 %v2321_v27, %s2079_s5 }
 0x599   :  { %v609_v28 = vpop.permute.xlu1 %608 }
 0x59a   :  { %1797 = vmatmul.mubr.msk.f32.vlgmr.msra.gmra.mrb[12].mxu0 %vm389_vm3, %v609_v28 }
 0x59b   :  { %1948 = vmatpush3.bf16.msra.mxu0 %v2198_v9  ;;  %1818 = vmatprep.mubr.msk.f32.mxu0 %vm2076_vm1, %v2075_v0 }
 0x59c   :  { %1949 = vmatprep.subr.bf16.mxu0 %v2077_v6 }
 0x59f   :  { %1951 = vmatpush3.bf16.msra.mxu0 %v2230_v19 }
 0x5a0   :  { %1958 = vmatprep.subr.bf16.mxu0 %v2077_v6 }
 0x66d   :  { %v678_v29 = vpop.f32.mrb[12].mxu0 }
 0x66e   :  { %v682_v30 = vadd.f32 %v678_v29, %v2290_v43  ;;  %v1798_v31 = vpop.f32.mrb[13].mxu0 }
 0x670   :  { %2027 = vtanh.f32 %v682_v30  ;;  %v1624_v33 = vmul.f32 -1.442695, %v682_v30 }
 0x672   :  { %2029 = vpow2.f32 %v1624_v33 }
 0x67a   :  { %v2028_v32 = vpop.eup %2027 }
 0x67b   :  { %692 = vrot.lane.b32.xlu0 %v2028_v32, %s2078_s4 }
 0x67c   :  { %v2030_v34 = vpop.eup %2029 }
 0x67d   :  { %v686_v35 = vadd.f32 1.0, %v2030_v34 }
 0x67f   :  { %2031 = vrcp.f32 %v686_v35 }
 0x689   :  { %v2032_v36 = vpop.eup %2031 }
 0x68a   :  { %v690_v39 = vmul.f32 %v2032_v36, %v591_v24 }
 0x6ed   :  { %v693_v37 = vpop.permute.xlu0 %692 }
 0x6ee   :  { %v695_v38 = vmul.f32 %v2032_v36, %v693_v37 }
 0x6f0   :  { %697 = vrot.lane.b32.xlu1 %v695_v38, %s2079_s5 }
 0x762   :  { %v698_v40 = vpop.permute.xlu1 %697 }
 0x763   :  { %v700_v42 = vadd.f32 %v698_v40, %v690_v39 }
 0x765   :  { %2033 = vtanh.f32 %v700_v42 }
 0x76f   :  { %v2034_v43 = vpop.eup %2033 }
 0x770   :  { %703 = vrot.lane.b32.xlu0 %v2034_v43, %s2078_s4 }
 0x7e2   :  { %v704_v44 = vpop.permute.xlu0 %703 }
 0x7e3   :  { %v2336_v46 = vmul.f32 %v2032_v36, %v704_v44 }
 0x7e5   :  { %717 = vrot.lane.b32.xlu1 %v2336_v46, %s2079_s5 }
 0x857   :  { %v718_v48 = vpop.permute.xlu1 %717 }
 0x858   :  { %1808 = vmatmul.mubr.msk.f32.vlgmr.msra.gmra.mrb[4].mxu1 %vm389_vm3, %v718_v48 }
 0x859   :  { %1954 = vmatpush3.bf16.msra.mxu1 %v2198_v9  ;;  %1829 = vmatprep.mubr.msk.f32.mxu1 %vm2076_vm1, %v2075_v0 }
 0x85a   :  { %1955 = vmatprep.subr.bf16.mxu1 %v2077_v6 }
 0x85d   :  { %1957 = vmatpush3.bf16.msra.mxu1 %v2230_v19 }
 0x85e   :  { %1964 = vmatprep.subr.bf16.mxu1 %v2077_v6 }
 0x92b   :  { %v787_v50 = vpop.f32.mrb[4].mxu1 }
 0x92c   :  { %v791_v52 = vadd.f32 %v787_v50, %v2288_v41  ;;  %v1809_v53 = vpop.f32.mrb[5].mxu1 }
 0x92e   :  { %2035 = vtanh.f32 %v791_v52  ;;  %v1626_v55 = vmul.f32 -1.442695, %v791_v52 }
 0x930   :  { %2037 = vpow2.f32 %v1626_v55 }
 0x938   :  { %v2036_v54 = vpop.eup %2035 }
 0x939   :  { %801 = vrot.lane.b32.xlu0 %v2036_v54, %s2078_s4 }
 0x93a   :  { %v2038_v56 = vpop.eup %2037 }
 0x93b   :  { %v795_v57 = vadd.f32 1.0, %v2038_v56 }
 0x93d   :  { %2039 = vrcp.f32 %v795_v57 }
 0x947   :  { %v2040_v58 = vpop.eup %2039 }
 0x948   :  { %v799_v61 = vmul.f32 %v2040_v58, %v700_v42 }
 0x9ab   :  { %v802_v59 = vpop.permute.xlu0 %801 }
 0x9ac   :  { %v804_v60 = vmul.f32 %v2040_v58, %v802_v59 }
 0x9ae   :  { %806 = vrot.lane.b32.xlu1 %v804_v60, %s2079_s5 }
 0xa20   :  { %v807_v62 = vpop.permute.xlu1 %806 }
 0xa21   :  { %v809_v1 = vadd.f32 %v807_v62, %v799_v61  ;;  %v1259_v61 = vld [vmem:[%s2532_s10] sm:$0xff]  ;;  %v1260_v62 = vld [vmem:[%s2532_s10 + $0x8] sm:$0xff] }
 0xa23   :  { %2041 = vtanh.f32 %v809_v1 }
 0xa2d   :  { %v2042_v41 = vpop.eup %2041 }
 0xa2e   :  { %812 = vrot.lane.b32.xlu0 %v2042_v41, %s2078_s4  ;;  %v1977_v41 = vpack.c.bf16 %v1260_v62, %v1259_v61 }
 0xaa0   :  { %v813_v2 = vpop.permute.xlu0 %812 }
 0xaa1   :  { %v2351_v3 = vmul.f32 %v2040_v58, %v813_v2 }
 0xaa3   :  { %826 = vrot.lane.b32.xlu1 %v2351_v3, %s2079_s5 }
 0xb15   :  { %v827_v4 = vpop.permute.xlu1 %826 }
 0xb16   :  { %1819 = vmatmul.mubr.msk.f32.vlgmr.msra.gmra.mrb[14].mxu0 %vm389_vm3, %v827_v4 }
 0xb17   :  { %1960 = vmatpush3.bf16.msra.mxu0 %v2198_v9  ;;  %1840 = vmatprep.mubr.msk.f32.mxu0 %vm2076_vm1, %v2075_v0 }
 0xb18   :  { %1961 = vmatprep.subr.bf16.mxu0 %v2077_v6 }
 0xb1b   :  { %1963 = vmatpush3.bf16.msra.mxu0 %v2230_v19 }
 0xb1c   :  { %1970 = vmatprep.subr.bf16.mxu0 %v2077_v6 }
 0xbe9   :  { %v896_v5 = vpop.f32.mrb[14].mxu0 }
 0xbea   :  { %v900_v7 = vadd.f32 %v896_v5, %v2296_v47  ;;  %v1820_v10 = vpop.f32.mrb[15].mxu0 }
 0xbec   :  { %2043 = vtanh.f32 %v900_v7  ;;  %v1628_v12 = vmul.f32 -1.442695, %v900_v7  ;;  %v2080_v7 = vmov 0  }
 0xbed   :  { %2009 = vset.pattern.permute.xlu0 %v2080_v7  ;;  %2010 = vset.pattern.permute.xlu1 %v2080_v7 }
 0xbee   :  { %2045 = vpow2.f32 %v1628_v12 }
 0xbf6   :  { %v2044_v11 = vpop.eup %2043 }
 0xbf7   :  { %910 = vrot.lane.b32.xlu0 %v2044_v11, %s2078_s4 }
 0xbf8   :  { %v2046_v13 = vpop.eup %2045 }
 0xbf9   :  { %v904_v14 = vadd.f32 1.0, %v2046_v13 }
 0xbfb   :  { %2047 = vrcp.f32 %v904_v14  ;;  %v387_v14 = vld [vmem:[%s2534_s2] sm:$0xff] }
 0xc05   :  { %v2048_v15 = vpop.eup %2047 }
 0xc06   :  { %v908_v18 = vmul.f32 %v2048_v15, %v809_v1  ;;  %v1608_v1 = vld [vmem:[%s2533_s6] ss:$0 sm:$0xff] }
 0xc07   :  { %v226_v2 = vadd.f32 %v1608_v1, %v2304_v63 }
 0xc09   :  { %v229_v5 = vmax.f32 %v226_v2, 0.0 }
 0xc69   :  { %v911_v16 = vpop.permute.xlu0 %910 }
 0xc6a   :  { %v913_v17 = vmul.f32 %v2048_v15, %v911_v16 }
 0xc6c   :  { %915 = vrot.lane.b32.xlu1 %v913_v17, %s2079_s5 }
 0xcde   :  { %v916_v20 = vpop.permute.xlu1 %915 }
 0xcdf   :  { %v918_v21 = vadd.f32 %v916_v20, %v908_v18 }
 0xce1   :  { %2049 = vtanh.f32 %v918_v21 }
 0xceb   :  { %v2050_v47 = vpop.eup %2049 }
 0xcec   :  { %921 = vrot.lane.b32.xlu0 %v2050_v47, %s2078_s4 }
 0xd5e   :  { %v922_v22 = vpop.permute.xlu0 %921 }
 0xd5f   :  { %v2366_v23 = vmul.f32 %v2048_v15, %v922_v22  ;;  %v1620_v15 = vadd.s32 4294967295, %v387_v14  ;;  %v1515_v14 = vld [vmem:[%s2537_s15 + $0x18] sm:$0xff] }
 0xd61   :  { %935 = vrot.lane.b32.xlu1 %v2366_v23, %s2079_s5  ;;  %vm489_vm5 = vcmp.eq.s32.totalorder %v1620_v15, 0  ;;  %vm816_vm6 = vcmp.eq.s32.totalorder %v1620_v15, 3  ;;  %vm1034_vm7 = vcmp.eq.s32.totalorder %v1620_v15, 5  ;;  %vm1252_vm8 = vcmp.eq.s32.totalorder %v1620_v15, 7 }
 0xd62   :  { %v490_v17 = vsel %vm489_vm5, 1, %v2080_v7  ;;  %v817_v18 = vsel %vm816_vm6, 1, %v2080_v7  ;;  %v1253_v20 = vsel %vm1252_vm8, 1, %v2080_v7  ;;  %vm598_vm9 = vcmp.eq.s32.totalorder %v1620_v15, 1 }
 0xd63   :  { %vm707_vm10 = vcmp.eq.s32.totalorder %v1620_v15, 2  ;;  %vm925_vm11 = vcmp.eq.s32.totalorder %v1620_v15, 4  ;;  %vm1143_vm12 = vcmp.eq.s32.totalorder %v1620_v15, 6 }
 0xdd3   :  { %v936_v24 = vpop.permute.xlu1 %935 }
 0xdd4   :  { %1830 = vmatmul.mubr.msk.f32.vlgmr.msra.gmra.mrb[6].mxu1 %vm389_vm3, %v936_v24 }
 0xdd5   :  { %1966 = vmatpush3.bf16.msra.mxu1 %v2198_v9  ;;  %1851 = vmatprep.mubr.msk.f32.mxu1 %vm2076_vm1, %v2075_v0 }
 0xdd6   :  { %1967 = vmatprep.subr.bf16.mxu1 %v2077_v6 }
 0xdd9   :  { %1969 = vmatpush3.bf16.msra.mxu1 %v2230_v19 }
 0xdda   :  { %1976 = vmatprep.subr.bf16.mxu1 %v2077_v6 }
 0xea7   :  { %v1005_v25 = vpop.f32.mrb[6].mxu1 }
 0xea8   :  { %v1009_v26 = vadd.f32 %v1005_v25, %v2294_v45  ;;  %v1831_v28 = vpop.f32.mrb[7].mxu1 }
 0xea9   :  { %v599_v28 = vsel %vm598_vm9, 1, %v2080_v7 }
 0xeaa   :  { %2051 = vtanh.f32 %v1009_v26  ;;  %v1630_v30 = vmul.f32 -1.442695, %v1009_v26 }
 0xeac   :  { %2053 = vpow2.f32 %v1630_v30  ;;  %v926_v30 = vsel %vm925_vm11, 1, %v2080_v7 }
 0xeb4   :  { %v2052_v29 = vpop.eup %2051 }
 0xeb5   :  { %1019 = vrot.lane.b32.xlu0 %v2052_v29, %s2078_s4  ;;  %v708_v29 = vsel %vm707_vm10, 1, %v2080_v7 }
 0xeb6   :  { %v2054_v9 = vpop.eup %2053 }
 0xeb7   :  { %v1013_v31 = vadd.f32 1.0, %v2054_v9  ;;  %v1144_v9 = vsel %vm1143_vm12, 1, %v2080_v7 }
 0xeb9   :  { %2055 = vrcp.f32 %v1013_v31 }
 0xec3   :  { %v2056_v32 = vpop.eup %2055 }
 0xec4   :  { %v1017_v19 = vmul.f32 %v2056_v32, %v918_v21 }
 0xf27   :  { %v1020_v33 = vpop.permute.xlu0 %1019 }
 0xf28   :  { %v1022_v34 = vmul.f32 %v2056_v32, %v1020_v33 }
 0xf2a   :  { %1024 = vrot.lane.b32.xlu1 %v1022_v34, %s2079_s5  ;;  %v1261_v34 = vld [vmem:[%s2535_s11] sm:$0xff] }
 0xf9c   :  { %v1025_v35 = vpop.permute.xlu1 %1024 }
 0xf9d   :  { %v1027_v36 = vadd.f32 %v1025_v35, %v1017_v19  ;;  %v1262_v19 = vld [vmem:[%s2535_s11 + $0x8] sm:$0xff]  ;;  %v1263_v35 = vld [vmem:[%s2535_s11 + $0x10] sm:$0xff] }
 0xf9f   :  { %2057 = vtanh.f32 %v1027_v36 }
 0xfa9   :  { %v2058_v45 = vpop.eup %2057 }
 0xfaa   :  { %1030 = vrot.lane.b32.xlu0 %v2058_v45, %s2078_s4  ;;  %v1264_v45 = vld [vmem:[%s2535_s11 + $0x18] sm:$0xff] }
0x101c   :  { %v1031_v37 = vpop.permute.xlu0 %1030 }
0x101d   :  { %v2381_v38 = vmul.f32 %v2056_v32, %v1031_v37  ;;  %v1974_v37 = vpack.c.bf16 %v1264_v45, %v1263_v35 }
0x101f   :  { %1044 = vrot.lane.b32.xlu1 %v2381_v38, %s2079_s5 }
0x1091   :  { %v1045_v39 = vpop.permute.xlu1 %1044 }
0x1092   :  { %1841 = vmatmul.mubr.msk.f32.vlgmr.msra.gmra.mrb[16].mxu0 %vm389_vm3, %v1045_v39 }
0x1093   :  { %1862 = vmatprep.mubr.msk.f32.mxu0 %vm2076_vm1, %v2075_v0 }
0x1165   :  { %v1114_v40 = vpop.f32.mrb[16].mxu0 }
0x1166   :  { %v1118_v42 = vadd.f32 %v1114_v40, %v2300_v51  ;;  %v1842_v43 = vpop.f32.mrb[17].mxu0 }
0x1168   :  { %2059 = vtanh.f32 %v1118_v42  ;;  %v1632_v48 = vmul.f32 -1.442695, %v1118_v42 }
0x116a   :  { %2061 = vpow2.f32 %v1632_v48 }
0x1172   :  { %v2060_v44 = vpop.eup %2059 }
0x1173   :  { %1128 = vrot.lane.b32.xlu0 %v2060_v44, %s2078_s4 }
0x1174   :  { %v2062_v50 = vpop.eup %2061 }
0x1175   :  { %v1122_v52 = vadd.f32 1.0, %v2062_v50 }
0x1177   :  { %2063 = vrcp.f32 %v1122_v52  ;;  %v1423_v52 = vld [vmem:[%s2536_s13] sm:$0xff] }
0x1181   :  { %v2064_v53 = vpop.eup %2063 }
0x1182   :  { %v1126_v56 = vmul.f32 %v2064_v53, %v1027_v36  ;;  %v1971_v36 = vpack.c.bf16 %v1262_v19, %v1261_v34 }
0x1184   :  { %1972 = vmatpush3.bf16.msra.mxu0 %v1971_v36 }
0x1185   :  { %1973 = vmatprep.subr.bf16.mxu0 %v2077_v6 }
0x1188   :  { %1975 = vmatpush3.bf16.msra.mxu0 %v1974_v37 }
0x1189   :  { %1991 = vmatprep.subr.bf16.mxu0 %v2077_v6 }
0x11e5   :  { %v1129_v54 = vpop.permute.xlu0 %1128 }
0x11e6   :  { %v1131_v55 = vmul.f32 %v2064_v53, %v1129_v54  ;;  %v1425_v54 = vld [vmem:[%s2536_s13 + $0x10] sm:$0xff] }
0x11e8   :  { %1133 = vrot.lane.b32.xlu1 %v1131_v55, %s2079_s5 }
0x125a   :  { %v1134_v57 = vpop.permute.xlu1 %1133 }
0x125b   :  { %v2391_v58 = vadd.f32 %v1134_v57, %v1126_v56  ;;  %v1426_v57 = vld [vmem:[%s2536_s13 + $0x18] sm:$0xff] }
0x125d   :  { %2065 = vtanh.f32 %v2391_v58 }
0x1267   :  { %v2066_v51 = vpop.eup %2065 }
0x1268   :  { %1139 = vrot.lane.b32.xlu0 %v2066_v51, %s2078_s4  ;;  %v1983_v51 = vpack.c.bf16 %v1426_v57, %v1425_v54 }
0x12da   :  { %v1140_v59 = vpop.permute.xlu0 %1139 }
0x12db   :  { %v2395_v60 = vmul.f32 %v2064_v53, %v1140_v59  ;;  %v1424_v53 = vld [vmem:[%s2536_s13 + $0x8] sm:$0xff] }
0x12dc   :  { %v1980_v56 = vpack.c.bf16 %v1424_v53, %v1423_v52 }
0x12dd   :  { %1153 = vrot.lane.b32.xlu1 %v2395_v60, %s2079_s5 }
0x134f   :  { %v1154_v4 = vpop.permute.xlu1 %1153 }
0x1350   :  { %1852 = vmatmul.mubr.msk.f32.vlgmr.msra.gmra.mrb[8].mxu1 %vm389_vm3, %v1154_v4 }
0x1351   :  { %1978 = vmatpush3.bf16.msra.mxu1 %v1977_v41  ;;  %1869 = vmatprep.mubr.msk.f32.mxu1 %vm2076_vm1, %v2075_v0 }
0x1352   :  { %1979 = vmatprep.subr.bf16.mxu1 %v2077_v6 }
0x1354   :  { %1870 = vmatmul.mubr.msk.f32.vlgmr.msra.gmra.mrb[10].mxu1 %vm1340_vm4, %v229_v5 }
0x1355   :  { %1888 = vmatprep.mubr.msk.f32.mxu1 %vm2076_vm1, %v2075_v0  ;;  %1981 = vmatpush3.bf16.msra.mxu1 %v1980_v56 }
0x1356   :  { %1982 = vmatprep.subr.bf16.mxu1 %v2077_v6 }
0x1359   :  { %1984 = vmatpush3.bf16.msra.mxu1 %v1983_v51 }
0x135a   :  { %1985 = vmatprep.subr.bf16.mxu1 %v2077_v6 }
0x1423   :  { %v1223_v10 = vpop.f32.mrb[8].mxu1 }
0x1424   :  { %v1227_v63 = vadd.f32 %v1223_v10, %v2298_v49  ;;  %v1853_v11 = vpop.f32.mrb[9].mxu1  ;;  %v1035_v49 = vsel %vm1034_vm7, 1, %v2080_v7  ;;  %v1512_v10 = vld [vmem:[%s2537_s15] sm:$0xff] }
0x1425   :  { %v1514_v11 = vld [vmem:[%s2537_s15 + $0x10] sm:$0xff] }
0x1426   :  { %2067 = vtanh.f32 %v1227_v63  ;;  %v1634_v21 = vmul.f32 -1.442695, %v1227_v63  ;;  %v1513_v63 = vld [vmem:[%s2537_s15 + $0x8] sm:$0xff]  ;;  %v1995_v15 = vpack.c.bf16 %v1515_v14, %v1514_v11 }
0x1427   :  { %v2416_v12 = vpop.f32.mrb[10].mxu1 }
0x1428   :  { %v1871_v13 = vpop.f32.mrb[11].mxu1  ;;  %2069 = vpow2.f32 %v1634_v21 }
0x1429   :  { %v1992_v13 = vpack.c.bf16 %v1513_v63, %v1512_v10 }
0x1430   :  { %v2068_v16 = vpop.eup %2067 }
0x1431   :  { %1237 = vrot.lane.b32.xlu0 %v2068_v16, %s2078_s4  ;;  %v1516_v16 = vld [vmem:[%s2537_s15 + $0x20] sm:$0xff] }
0x1432   :  { %v2070_v47 = vpop.eup %2069 }
0x1433   :  { %v1231_v22 = vadd.f32 1.0, %v2070_v47 }
0x1435   :  { %492 = vperm.xlu0 %2009, %v490_v17   ;;  %2071 = vrcp.f32 %v1231_v22  ;;  %v1517_v17 = vld [vmem:[%s2537_s15 + $0x28] sm:$0xff] }
0x1439   :  { %819 = vperm.xlu0 %2009, %v817_v18   ;;  %v1998_v18 = vpack.c.bf16 %v1517_v17, %v1516_v16 }
0x143d   :  { %1037 = vperm.xlu0 %2009, %v1035_v49  }
0x143f   :  { %v2422_v24 = vpop.eup %2071 }
0x1440   :  { %v1235_v31 = vmul.f32 %v2422_v24, %v2391_v58 }
0x1441   :  { %1255 = vperm.xlu0 %2009, %v1253_v20   ;;  %v1637_v20 = vld [vmem:[%s2538_s12] ss:$0 sm:$0xff] }
0x14a3   :  { %v1238_v25 = vpop.permute.xlu0 %1237 }
0x14a4   :  { %v1240_v26 = vmul.f32 %v2422_v24, %v1238_v25  ;;  %v1518_v25 = vld [vmem:[%s2537_s15 + $0x30] sm:$0xff] }
0x14a6   :  { %1242 = vrot.lane.b32.xlu1 %v1240_v26, %s2079_s5 }
0x14aa   :  { %601 = vperm.xlu1 %2010, %v599_v28   ;;  %v1638_v28 = vld [vmem:[%s2539_s14] ss:$0 sm:$0xff] }
0x14ae   :  { %710 = vperm.xlu1 %2010, %v708_v29  }
0x14b2   :  { %928 = vperm.xlu1 %2010, %v926_v30  }
0x14b4   :  { %v493_v43 = vpop.permute.xlu0 %492 }
0x14b5   :  { %vm494_vm13 = vcmp.eq.s32.totalorder %v493_v43, 1 }
0x14b6   :  { %1146 = vperm.xlu1 %2010, %v1144_v9   ;;  %v495_v50 = vsel %vm494_vm13, %v2307_v8, 0.0 }
0x14b8   :  { %v820_v44 = vpop.permute.xlu0 %819 }
0x14b9   :  { %vm821_vm0 = vcmp.eq.s32.totalorder %v820_v44, 1 }
0x14bc   :  { %v1038_v58 = vpop.permute.xlu0 %1037 }
0x14bd   :  { %vm1039_vm5 = vcmp.eq.s32.totalorder %v1038_v58, 1 }
0x1518   :  { %v1243_v32 = vpop.permute.xlu1 %1242 }
0x1519   :  { %v1245_v33 = vadd.f32 %v1243_v32, %v1235_v31  ;;  %v1640_v31 = vld [vmem:[%s2540_s16] ss:$0 sm:$0xff] }
0x151b   :  { %2073 = vtanh.f32 %v1245_v33 }
0x1525   :  { %v2074_v39 = vpop.eup %2073 }
0x1526   :  { %1248 = vrot.lane.b32.xlu1 %v2074_v39, %s2078_s4 }
0x1529   :  { %v602_v40 = vpop.permute.xlu1 %601 }
0x152a   :  { %vm603_vm14 = vcmp.eq.s32.totalorder %v602_v40, 1 }
0x152b   :  { %v604_v55 = vsel %vm603_vm14, %v2321_v27, %v495_v50  ;;  %v1256_v27 = vpop.permute.xlu0 %1255 }
0x152c   :  { %vm1257_vm7 = vcmp.eq.s32.totalorder %v1256_v27, 1 }
0x152d   :  { %v711_v42 = vpop.permute.xlu1 %710 }
0x152e   :  { %vm712_vm15 = vcmp.eq.s32.totalorder %v711_v42, 1 }
0x152f   :  { %v713_v8 = vsel %vm712_vm15, %v2336_v46, %v604_v55 }
0x1530   :  { %v822_v61 = vsel %vm821_vm0, %v2351_v3, %v713_v8 }
0x1531   :  { %v929_v48 = vpop.permute.xlu1 %928 }
0x1532   :  { %vm930_vm4 = vcmp.eq.s32.totalorder %v929_v48, 1 }
0x1533   :  { %v931_v62 = vsel %vm930_vm4, %v2366_v23, %v822_v61  ;;  %v1427_v23 = vld [vmem:[%s2536_s13 + $0x20] sm:$0xff] }
0x1534   :  { %v1040_v46 = vsel %vm1039_vm5, %v2381_v38, %v931_v62  ;;  %v1428_v38 = vld [vmem:[%s2536_s13 + $0x28] sm:$0xff] }
0x1535   :  { %v1147_v59 = vpop.permute.xlu1 %1146  ;;  %v1986_v5 = vpack.c.bf16 %v1428_v38, %v1427_v23 }
0x1536   :  { %vm1148_vm6 = vcmp.eq.s32.totalorder %v1147_v59, 1 }
0x1537   :  { %v1149_v2 = vsel %vm1148_vm6, %v2395_v60, %v1040_v46  ;;  %1987 = vmatpush3.bf16.msra.mxu1 %v1986_v5  ;;  %v1429_v60 = vld [vmem:[%s2536_s13 + $0x30] sm:$0xff] }
0x1538   :  { %1988 = vmatprep.subr.bf16.mxu1 %v2077_v6 }
0x1598   :  { %v1249_v1 = vpop.permute.xlu1 %1248 }
0x1599   :  { %v1251_v41 = vmul.f32 %v2422_v24, %v1249_v1 }
0x159b   :  { %v1258_v4 = vsel %vm1257_vm7, %v1251_v41, %v1149_v2 }
0x159c   :  { %1266 = vrot.lane.b32.xlu0 %v1258_v4, %s2079_s5 }
0x160e   :  { %v1267_v3 = vpop.permute.xlu0 %1266 }
0x160f   :  { %1863 = vmatmul.mubr.msk.f32.vlgmr.msra.gmra.mrb[18].mxu0 %vm389_vm3, %v1267_v3 }
0x1610   :  { %1907 = vmatprep.mubr.msk.f32.mxu0 %vm2076_vm1, %v2075_v0  ;;  %v1430_v0 = vld [vmem:[%s2536_s13 + $0x38] sm:$0xff]  ;;  %1993 = vmatpush3.bf16.msra.mxu0 %v1992_v13  ;;  %vm1600_vm1 = vcmask 15360  }
0x1611   :  { %v1989_v7 = vpack.c.bf16 %v1430_v0, %v1429_v60  ;;  %1994 = vmatprep.subr.bf16.mxu0 %v2077_v6 }
0x1613   :  { %1990 = vmatpush3.bf16.msra.mxu1 %v1989_v7 }
0x1614   :  { %1996 = vmatpush3.bf16.msra.mxu0 %v1995_v15 }
0x1615   :  { %1997 = vmatprep.subr.bf16.mxu0 %v2077_v6 }
0x1618   :  { %1999 = vmatpush3.bf16.msra.mxu0 %v1998_v18 }
0x1619   :  { %2000 = vmatprep.subr.bf16.mxu0 %v2077_v6  ;;  %v1519_v6 = vld [vmem:[%s2537_s15 + $0x38] sm:$0xff] }
0x161a   :  { %v2001_v26 = vpack.c.bf16 %v1519_v6, %v1518_v25 }
0x161c   :  { %2002 = vmatpush3.bf16.msra.mxu0 %v2001_v26 }
0x16e2   :  { %v1336_v49 = vpop.f32.mrb[18].mxu0 }
0x16e3   :  { %v1411_v21 = vadd.f32 %v2416_v12, %v1336_v49  ;;  %v1864_v47 = vpop.f32.mrb[19].mxu0 }
0x16e5   :  { %v1421_v22 = vadd.f32 %v1637_v20, %v1411_v21 }
0x16e7   :  { %v1422_v24 = vmax.f32 %v1421_v22, 0.0 }
0x16e9   :  { %1889 = vmatmul.mubr.msk.f32.vlgmr.msra.gmra.mrb[12].mxu1 %vm155_vm2, %v1422_v24 }
0x17bc   :  { %v1507_v12 = vpop.f32.mrb[12].mxu1 }
0x17bd   :  { %v1508_v29 = vadd.f32 %v1638_v28, %v1507_v12  ;;  %v1890_v30 = vpop.f32.mrb[13].mxu1 }
0x17bf   :  { %v1511_v9 = vmax.f32 %v1508_v29, 0.0 }
0x17c1   :  { %1908 = vmatmul.mubr.msk.f32.vlgmr.msra.gmra.mrb[20].mxu0 %vm155_vm2, %v1511_v9 }
0x1894   :  { %v1596_v32 = vpop.f32.mrb[20].mxu0 }
0x1895   :  { %v1597_v33 = vadd.f32 %v1640_v31, %v1596_v32  ;;  %v1909_v34 = vpop.f32.mrb[21].mxu0 }
0x1897   :  { %1601 = vst.msk [vmem:[%s2541_s17] sm:$0xff] %vm1600_vm1, %v1597_v33 }

</bundles_post_ra>
